<compile_context>
chip_gen: v5e
topology: v5e:2x2
jax: 0.10.0
libtpu: 0.0.40
codegen_flags: <defaults>
</compile_context>

<pallas_src>
import jax
import jax.numpy as jnp
import numpy as np
from jax.experimental import pallas as pl
from jax.experimental.pallas import tpu as pltpu

LEAKY_SLOPE = 0.01  # PyTorch nn.LeakyReLU default negative_slope


def _make_mlp_kernel(num_linear):
    """Build a fused kernel for `num_linear` Linear layers (traced once)."""

    def kernel(x_ref, *refs):
        out_ref = refs[-1]
        wb_refs = refs[:-1]            # (w1, b1, w2, b2, ..., wL, bL)

        h = x_ref[...]                                            # [TB, E] f32
        for l in range(num_linear):
            w = wb_refs[2 * l][...]                               # [in, out] bf16
            b = wb_refs[2 * l + 1][...]                           # [1, out]  f32
            # bf16 MXU matmul with f32 accumulation.
            h = jnp.dot(h.astype(w.dtype), w,
                        preferred_element_type=jnp.float32)       # [TB, out] f32
            h = h + b
            if l < num_linear - 1:
                h = jnp.maximum(h, LEAKY_SLOPE * h)               # LeakyReLU
                # Dropout(p): identity in eval mode / dropout=0 -> nothing to do.
            else:
                # Sigmoid: exp and reciprocal both go to the EUP slot.
                h = pl.reciprocal(1.0 + jnp.exp(-h), approx=True)
        out_ref[...] = h.astype(out_ref.dtype)

    return kernel


def _pick_tile_b(B):
    """MXU-aligned batch tile; keep >=2 grid steps when possible (v7x dual-TC)."""
    for t in (256, 128):
        if B % t == 0 and B // t >= 2:
            return t
    for t in (256, 128, 64, 32, 16, 8):
        if B % t == 0:
            return t
    return B


def mlp_forward(x, layers, *, tile_b=None):
    """x: [B, input_dim] f32.  layers: list of (W[in,out] bf16, b[1,out] f32)."""
    B, E = x.shape
    O = layers[-1][0].shape[1]
    if tile_b is None:
        tile_b = _pick_tile_b(B)
    assert B % tile_b == 0, "batch must be a multiple of the batch tile"

    full = lambda i: (0, 0)  # grid-constant (replicated) operands

    in_specs = [pl.BlockSpec((tile_b, E), lambda i: (i, 0))]      # x tile
    flat_args = [x]
    for (w, b) in layers:
        in_specs.append(pl.BlockSpec(w.shape, full))              # W_l (full block)
        in_specs.append(pl.BlockSpec(b.shape, full))              # b_l (full block)
        flat_args += [w, b]

    kernel = _make_mlp_kernel(len(layers))

    return pl.pallas_call(
        kernel,
        out_shape=jax.ShapeDtypeStruct((B, O), jnp.float32),
        grid_spec=pltpu.PrefetchScalarGridSpec(
            num_scalar_prefetch=0,
            grid=(B // tile_b,),
            in_specs=in_specs,
            out_specs=pl.BlockSpec((tile_b, O), lambda i: (i, 0)),
        ),
        compiler_params=pltpu.CompilerParams(
            dimension_semantics=("parallel",),
            vmem_limit_bytes=32 * 1024 * 1024,
        ),
    )(*flat_args)


# ----------------------------- parameters & reference -----------------------------

def init_mlp_params(key, input_dim, hidden_dims, output_dim):
    """PyTorch-style Linear init (U(-1/sqrt(fan_in), 1/sqrt(fan_in))), f32 [in,out]."""
    dims = [input_dim] + list(hidden_dims) + [output_dim]
    layers = []
    for i in range(len(dims) - 1):
        key, kw, kb = jax.random.split(key, 3)
        bound = 1.0 / np.sqrt(dims[i])
        w = jax.random.uniform(kw, (dims[i], dims[i + 1]), jnp.float32, -bound, bound)
        b = jax.random.uniform(kb, (dims[i + 1],), jnp.float32, -bound, bound)
        layers.append((w, b))
    return layers


def prep_kernel_params(layers_f32):
    """One-time host-side transform: bf16 weights, [1,out] f32 biases."""
    return [(w.astype(jnp.bfloat16), b.reshape(1, -1)) for (w, b) in layers_f32]


def mlp_reference(x, layers_f32):
    """Pure-JAX f32 reference matching eval-mode PyTorch MLP semantics."""
    h = x
    n = len(layers_f32)
    for l, (w, b) in enumerate(layers_f32):
        h = h @ w + b
        if l < n - 1:
            h = jnp.where(h > 0, h, LEAKY_SLOPE * h)   # LeakyReLU
        else:
            h = jax.nn.sigmoid(h)
    return h


if __name__ == "__main__":
    # MLP(input_dim=32, hidden_dims=(128, 128), output_dim=16), batch 256.
    B, E, HIDDEN, O = 256, 32, (128, 128), 16

    key = jax.random.PRNGKey(0)
    kx, kp = jax.random.split(key)
    x = jax.random.normal(kx, (B, E), jnp.float32)

    layers_f32 = init_mlp_params(kp, E, HIDDEN, O)
    layers = prep_kernel_params(layers_f32)

    out = mlp_forward(x, layers)          # tile_b auto -> 128, grid=(2,)
    out = jax.block_until_ready(out)

    ref = mlp_reference(x, layers_f32)
    # bf16 matmul inputs + approx reciprocal -> relaxed tolerance vs f32 reference.
    np.testing.assert_allclose(np.asarray(out), np.asarray(ref), rtol=2e-2, atol=1e-2)

    print("KERNEL_OK")
</pallas_src>

<mosaic_0001>
module attributes {stable_mosaic.version = 11 : i64} {
  func.func @kernel(%arg0: i32, %arg1: memref<128x32xf32, #tpu.memory_space<vmem>>, %arg2: memref<32x128xbf16, #tpu.memory_space<vmem>>, %arg3: memref<1x128xf32, #tpu.memory_space<vmem>>, %arg4: memref<128x128xbf16, #tpu.memory_space<vmem>>, %arg5: memref<1x128xf32, #tpu.memory_space<vmem>>, %arg6: memref<128x16xbf16, #tpu.memory_space<vmem>>, %arg7: memref<1x16xf32, #tpu.memory_space<vmem>>, %arg8: memref<128x16xf32, #tpu.memory_space<vmem>>) attributes {dimension_semantics = [#tpu.dimension_semantics<parallel>], iteration_bounds = array<i64: 2>, scalar_prefetch = 0 : i64, scratch_operands = 0 : i64, tpu.core_type = #tpu.core_type<tc>, window_params = [{transform_indices = @transform_0, window_bounds = array<i64: 128, 32>}, {pipeline_mode = #tpu.pipeline_mode<synchronous>, transform_indices = @transform_1, window_bounds = array<i64: 32, 128>}, {pipeline_mode = #tpu.pipeline_mode<synchronous>, transform_indices = @transform_2, window_bounds = array<i64: 1, 128>}, {pipeline_mode = #tpu.pipeline_mode<synchronous>, transform_indices = @transform_3, window_bounds = array<i64: 128, 128>}, {pipeline_mode = #tpu.pipeline_mode<synchronous>, transform_indices = @transform_4, window_bounds = array<i64: 1, 128>}, {pipeline_mode = #tpu.pipeline_mode<synchronous>, transform_indices = @transform_5, window_bounds = array<i64: 128, 16>}, {pipeline_mode = #tpu.pipeline_mode<synchronous>, transform_indices = @transform_6, window_bounds = array<i64: 1, 16>}, {transform_indices = @transform_7, window_bounds = array<i64: 128, 16>}]} {
    %c0 = arith.constant 0 : index
    %c0_0 = arith.constant 0 : index
    %0 = vector.load %arg1[%c0, %c0_0] : memref<128x32xf32, #tpu.memory_space<vmem>>, vector<128x32xf32>
    %c0_1 = arith.constant 0 : index
    %c0_2 = arith.constant 0 : index
    %1 = vector.load %arg2[%c0_1, %c0_2] : memref<32x128xbf16, #tpu.memory_space<vmem>>, vector<32x128xbf16>
    %c0_3 = arith.constant 0 : index
    %c0_4 = arith.constant 0 : index
    %2 = vector.load %arg3[%c0_3, %c0_4] : memref<1x128xf32, #tpu.memory_space<vmem>>, vector<1x128xf32>
    %3 = arith.truncf %0 : vector<128x32xf32> to vector<128x32xbf16>
    %cst = arith.constant dense<0.000000e+00> : vector<128x128xf32>
    %4 = tpu.matmul %3, %1, %cst {dimension_numbers = #tpu.dot_dimension_numbers<[1], [0], [0], [1], [0, 0, 1, 1], [], []>} : vector<128x32xbf16>, vector<32x128xbf16>, vector<128x128xf32> -> vector<128x128xf32>
    %5 = vector.broadcast %2 : vector<1x128xf32> to vector<128x128xf32>
    %6 = arith.addf %4, %5 : vector<128x128xf32>
    %cst_5 = arith.constant 0.00999999977 : f32
    %7 = vector.broadcast %cst_5 : f32 to vector<128x128xf32>
    %8 = arith.mulf %7, %6 : vector<128x128xf32>
    %9 = arith.maximumf %6, %8 : vector<128x128xf32>
    %c0_6 = arith.constant 0 : index
    %c0_7 = arith.constant 0 : index
    %10 = vector.load %arg4[%c0_6, %c0_7] : memref<128x128xbf16, #tpu.memory_space<vmem>>, vector<128x128xbf16>
    %c0_8 = arith.constant 0 : index
    %c0_9 = arith.constant 0 : index
    %11 = vector.load %arg5[%c0_8, %c0_9] : memref<1x128xf32, #tpu.memory_space<vmem>>, vector<1x128xf32>
    %12 = arith.truncf %9 : vector<128x128xf32> to vector<128x128xbf16>
    %cst_10 = arith.constant dense<0.000000e+00> : vector<128x128xf32>
    %13 = tpu.matmul %12, %10, %cst_10 {dimension_numbers = #tpu.dot_dimension_numbers<[1], [0], [0], [1], [0, 0, 1, 1], [], []>} : vector<128x128xbf16>, vector<128x128xbf16>, vector<128x128xf32> -> vector<128x128xf32>
    %14 = vector.broadcast %11 : vector<1x128xf32> to vector<128x128xf32>
    %15 = arith.addf %13, %14 : vector<128x128xf32>
    %cst_11 = arith.constant 0.00999999977 : f32
    %16 = vector.broadcast %cst_11 : f32 to vector<128x128xf32>
    %17 = arith.mulf %16, %15 : vector<128x128xf32>
    %18 = arith.maximumf %15, %17 : vector<128x128xf32>
    %c0_12 = arith.constant 0 : index
    %c0_13 = arith.constant 0 : index
    %19 = vector.load %arg6[%c0_12, %c0_13] : memref<128x16xbf16, #tpu.memory_space<vmem>>, vector<128x16xbf16>
    %c0_14 = arith.constant 0 : index
    %c0_15 = arith.constant 0 : index
    %20 = vector.load %arg7[%c0_14, %c0_15] : memref<1x16xf32, #tpu.memory_space<vmem>>, vector<1x16xf32>
    %21 = arith.truncf %18 : vector<128x128xf32> to vector<128x128xbf16>
    %cst_16 = arith.constant dense<0.000000e+00> : vector<128x16xf32>
    %22 = tpu.matmul %21, %19, %cst_16 {dimension_numbers = #tpu.dot_dimension_numbers<[1], [0], [0], [1], [0, 0, 1, 1], [], []>} : vector<128x128xbf16>, vector<128x16xbf16>, vector<128x16xf32> -> vector<128x16xf32>
    %23 = vector.broadcast %20 : vector<1x16xf32> to vector<128x16xf32>
    %24 = arith.addf %22, %23 : vector<128x16xf32>
    %cst_17 = arith.constant 0.000000e+00 : f32
    %25 = vector.broadcast %cst_17 : f32 to vector<128x16xf32>
    %26 = arith.subf %25, %24 : vector<128x16xf32>
    %27 = math.exp %26 : vector<128x16xf32>
    %cst_18 = arith.constant 1.000000e+00 : f32
    %28 = vector.broadcast %cst_18 : f32 to vector<128x16xf32>
    %29 = arith.addf %28, %27 : vector<128x16xf32>
    %30 = tpu.reciprocal %29 {approx = true} : vector<128x16xf32> -> vector<128x16xf32>
    %c0_19 = arith.constant 0 : index
    %c0_20 = arith.constant 0 : index
    %31 = vector.load %arg8[%c0_19, %c0_20] : memref<128x16xf32, #tpu.memory_space<vmem>>, vector<128x16xf32>
    tpu.vector_store %arg8[%c0_19, %c0_20], %30 {strides = array<i32>} : memref<128x16xf32, #tpu.memory_space<vmem>>, vector<128x16xf32>,
    return
  }
  func.func @transform_0(%arg0: i32) -> (i32, i32) {
    %c0_i32 = arith.constant 0 : i32
    %c0_i32_0 = arith.constant 0 : i32
    return %arg0, %c0_i32 : i32, i32
  }
  func.func @transform_1(%arg0: i32) -> (i32, i32) {
    %c0_i32 = arith.constant 0 : i32
    %c0_i32_0 = arith.constant 0 : i32
    %c0_i32_1 = arith.constant 0 : i32
    return %c0_i32, %c0_i32_0 : i32, i32
  }
  func.func @transform_2(%arg0: i32) -> (i32, i32) {
    %c0_i32 = arith.constant 0 : i32
    %c0_i32_0 = arith.constant 0 : i32
    %c0_i32_1 = arith.constant 0 : i32
    return %c0_i32, %c0_i32_0 : i32, i32
  }
  func.func @transform_3(%arg0: i32) -> (i32, i32) {
    %c0_i32 = arith.constant 0 : i32
    %c0_i32_0 = arith.constant 0 : i32
    %c0_i32_1 = arith.constant 0 : i32
    return %c0_i32, %c0_i32_0 : i32, i32
  }
  func.func @transform_4(%arg0: i32) -> (i32, i32) {
    %c0_i32 = arith.constant 0 : i32
    %c0_i32_0 = arith.constant 0 : i32
    %c0_i32_1 = arith.constant 0 : i32
    return %c0_i32, %c0_i32_0 : i32, i32
  }
  func.func @transform_5(%arg0: i32) -> (i32, i32) {
    %c0_i32 = arith.constant 0 : i32
    %c0_i32_0 = arith.constant 0 : i32
    %c0_i32_1 = arith.constant 0 : i32
    return %c0_i32, %c0_i32_0 : i32, i32
  }
  func.func @transform_6(%arg0: i32) -> (i32, i32) {
    %c0_i32 = arith.constant 0 : i32
    %c0_i32_0 = arith.constant 0 : i32
    %c0_i32_1 = arith.constant 0 : i32
    return %c0_i32, %c0_i32_0 : i32, i32
  }
  func.func @transform_7(%arg0: i32) -> (i32, i32) {
    %c0_i32 = arith.constant 0 : i32
    %c0_i32_0 = arith.constant 0 : i32
    return %arg0, %c0_i32 : i32, i32
  }
}

</mosaic_0001>

<bundles_post_ra>
// kernel: tpu_custom_call.1
= control target key start
LH: loop header
LB: loop body
LE: loop exit
PB: predicated region body
PF: predicated region fallthrough
CT: control target
= control target key end

     0   :  { %s1116_s24 = smov 0   ;;  %s1317_s0 = inlined_call_operand.vmem [shape: f32[256,32], index: 0, kind: input, shape index: {}]   ;;  %s1318_s1 = inlined_call_operand.vmem [shape: bf16[32,128], index: 1, kind: input, shape index: {}]   ;;  %s1319_s2 = inlined_call_operand.vmem [shape: f32[1,128], index: 2, kind: input, shape index: {}]   ;;  %s1320_s3 = inlined_call_operand.vmem [shape: bf16[128,128], index: 3, kind: input, shape index: {}]   ;;  %s1321_s4 = inlined_call_operand.vmem [shape: f32[1,128], index: 4, kind: input, shape index: {}]   ;;  %s1322_s5 = inlined_call_operand.vmem [shape: bf16[128,16], index: 5, kind: input, shape index: {}]   ;;  %s1323_s6 = inlined_call_operand.vmem [shape: f32[1,16], index: 6, kind: input, shape index: {}]   ;;  %s1324_s7 = inlined_call_operand.vmem [shape: f32[256,16], index: 7, kind: output, shape index: {}]  }
   0x1 LB: > { %s868_s25 = sadd.s32 4294967295, %s1074_s24   ;;  %p872_p0 = scmp.ge.s32.totalorder %s1074_s24, 1  ;;  %s1074_s24 = sphi %s1116_s24, %s17_s24  }
   0x2   : > { %p238_p1 = scmp.lt.s32.totalorder %s1074_s24, 3 }
   0x4   : > { %p239_p2 = pnand %p872_p0, %p238_p1 }
   0x5   : > { %s873_s28 = sshll.u32 (!%p239_p2), %s868_s25, 4 }
   0x6   : > { %242 = sbr.rel (%p239_p2) target bundleno = 584 (0x248), region = 48  ;;  %p271_p3 = scmp.lt.s32.totalorder (!%p239_p2), %s873_s28, 31 }
   0xb   : > { %v960_v0 = vld [vmem:[%s1318_s1 + $0x8] sm:$0xff]  ;;  %v959_v1 = vld [vmem:[%s1318_s1] sm:$0xff]  ;;  %s1326_s28 = smov (!%p271_p3, %s873_s28), 31  ;;  %vm327_vm0 = vcmask 261120   ;;  %v968_v17 = vld [vmem:[%s1320_s3 + $0x38] sm:$0xff]  ;;  %vm795_vm1 = vcmask 130048  }
   0xc   : > { %358 = vmatpush.bf16.msra.mxu0 %v960_v0  ;;  %s874_s8 = sshll.u32 %s1326_s28, 3  ;;  %509 = vmatpush.bf16.msra.mxu1 %v968_v17  ;;  %v967_v21 = vld [vmem:[%s1320_s3 + $0x30] sm:$0xff]  ;;  %v966_v22 = vld [vmem:[%s1320_s3 + $0x28] sm:$0xff]  ;;  %v965_v23 = vld [vmem:[%s1320_s3 + $0x20] sm:$0xff] }
   0xd   : > { %s1138_s11 = scalar_lea.vmem %s1317_s0, %s874_s8  ;;  %977 = vmatpush.bf16.msra.mxu3 %v968_v17  ;;  %v964_v27 = vld [vmem:[%s1320_s3 + $0x18] sm:$0xff]  ;;  %v963_v28 = vld [vmem:[%s1320_s3 + $0x10] sm:$0xff]  ;;  %v962_v29 = vld [vmem:[%s1320_s3 + $0x8] sm:$0xff]  ;;  %s1267_s12 = scalar_lea.vmem %s1324_s7, %s874_s8 }
   0xe   : > { %v283_v2 = vld [vmem:[%s1138_s11] sm:$0xff]  ;;  %v284_v3 = vld [vmem:[%s1138_s11 + $0x8] sm:$0xff]  ;;  %v285_v5 = vld [vmem:[%s1138_s11 + $0x10] sm:$0xff] }
   0xf   : > { %v304_v4 = vpack.c.bf16 %v284_v3, %v283_v2  ;;  %v286_v6 = vld [vmem:[%s1138_s11 + $0x18] sm:$0xff]  ;;  %v287_v8 = vld [vmem:[%s1138_s11 + $0x20] sm:$0xff]  ;;  %v288_v9 = vld [vmem:[%s1138_s11 + $0x28] sm:$0xff] }
  0x10   : > { %359 = vmatpush.bf16.msra.mxu0 %v959_v1  ;;  %v305_v7 = vpack.c.bf16 %v286_v6, %v285_v5  ;;  %v306_v10 = vpack.c.bf16 %v288_v9, %v287_v8  ;;  %v289_v11 = vld [vmem:[%s1138_s11 + $0x30] sm:$0xff]  ;;  %v290_v12 = vld [vmem:[%s1138_s11 + $0x38] sm:$0xff]  ;;  %v291_v14 = vld [vmem:[%s1138_s11 + $0x40] sm:$0xff]  ;;  %510 = vmatpush.bf16.msra.mxu1 %v967_v21 }
  0x11   : > { %v307_v13 = vpack.c.bf16 %v290_v12, %v289_v11  ;;  %v292_v15 = vld [vmem:[%s1138_s11 + $0x48] sm:$0xff]  ;;  %v293_v18 = vld [vmem:[%s1138_s11 + $0x50] sm:$0xff]  ;;  %v294_v19 = vld [vmem:[%s1138_s11 + $0x58] sm:$0xff]  ;;  %978 = vmatpush.bf16.msra.mxu3 %v967_v21 }
  0x12   : > { %v308_v16 = vpack.c.bf16 %v292_v15, %v291_v14  ;;  %v309_v20 = vpack.c.bf16 %v294_v19, %v293_v18  ;;  %v295_v24 = vld [vmem:[%s1138_s11 + $0x60] sm:$0xff]  ;;  %v296_v25 = vld [vmem:[%s1138_s11 + $0x68] sm:$0xff]  ;;  %v297_v30 = vld [vmem:[%s1138_s11 + $0x70] sm:$0xff] }
  0x13   : > { %885 = vmatmul.msk.bf16.vlgmr.msra.gmra.mxu0 %vm327_vm0, %v304_v4  ;;  %v310_v26 = vpack.c.bf16 %v296_v25, %v295_v24  ;;  %v298_v31 = vld [vmem:[%s1138_s11 + $0x78] sm:$0xff]  ;;  %v961_v32 = vld [vmem:[%s1320_s3] sm:$0xff] }
  0x14   : > { %511 = vmatpush.bf16.msra.mxu1 %v966_v22  ;;  %v311_v33 = vpack.c.bf16 %v298_v31, %v297_v30  ;;  %v1191_v35 = vld [vmem:[%s1319_s2] ss:$0 sm:$0xff]  ;;  %v976_v24 = vld [vmem:[%s1322_s5 + $0x38] sm:$0xff] }
  0x15   : > { %979 = vmatpush.bf16.msra.mxu3 %v966_v22  ;;  %666 = vmatpush.bf16.msra.mxu2 %v976_v24  ;;  %v973_v30 = vld [vmem:[%s1322_s5 + $0x20] sm:$0xff] }
  0x18   : > { %512 = vmatpush.bf16.msra.mxu1 %v965_v23 }
  0x19   : > { %980 = vmatpush.bf16.msra.mxu3 %v965_v23 }
  0x1c   : > { %513 = vmatpush.bf16.msra.mxu1 %v964_v27 }
  0x1d   : > { %981 = vmatpush.bf16.msra.mxu3 %v964_v27  ;;  %v975_v27 = vld [vmem:[%s1322_s5 + $0x30] sm:$0xff] }
  0x1e   : > { %667 = vmatpush.bf16.msra.mxu2 %v975_v27 }
  0x20   : > { %514 = vmatpush.bf16.msra.mxu1 %v963_v28 }
  0x21   : > { %982 = vmatpush.bf16.msra.mxu3 %v963_v28  ;;  %v974_v28 = vld [vmem:[%s1322_s5 + $0x28] sm:$0xff] }
  0x22   : > { %668 = vmatpush.bf16.msra.mxu2 %v974_v28 }
  0x23   : > { %886 = vmatmul.msk.bf16.gmra.mxu0 %vm327_vm0, %v305_v7 }
  0x24   : > { %515 = vmatpush.bf16.msra.mxu1 %v962_v29 }
  0x25   : > { %983 = vmatpush.bf16.msra.mxu3 %v962_v29 }
  0x26   : > { %669 = vmatpush.bf16.msra.mxu2 %v973_v30 }
  0x28   : > { %516 = vmatpush.bf16.msra.mxu1 %v961_v32 }
  0x29   : > { %984 = vmatpush.bf16.msra.mxu3 %v961_v32 }
  0x2d   : > { %985 = vmatpush.bf16.msrb.mxu3 %v976_v24 }
  0x31   : > { %986 = vmatpush.bf16.msrb.mxu3 %v975_v27 }
  0x33   : > { %887 = vmatmul.msk.bf16.gmra.mxu0 %vm327_vm0, %v306_v10 }
  0x35   : > { %987 = vmatpush.bf16.msrb.mxu3 %v974_v28 }
  0x39   : > { %988 = vmatpush.bf16.msrb.mxu3 %v973_v30 }
  0x43   : > { %888 = vmatmul.msk.bf16.gmra.mxu0 %vm327_vm0, %v307_v13 }
  0x53   : > { %889 = vmatmul.msk.bf16.gmra.mxu0 %vm327_vm0, %v308_v16 }
  0x63   : > { %890 = vmatmul.msk.bf16.gmra.mxu0 %vm327_vm0, %v309_v20 }
  0x73   : > { %891 = vmatmul.msk.bf16.gmra.mxu0 %vm327_vm0, %v310_v26 }
  0x83   : > { %892 = vmatmul.msk.bf16.gmra.mxu0 %vm327_vm0, %v311_v33 }
  0x90   : > { %v361_v34 = vpop.f32.mrf.mxu0 }
  0x91   : > { %v362_v36 = vadd.f32 %v1191_v35, %v361_v34 }
  0x93   : > { %v401_v38 = vmul.f32 0.01, %v362_v36 }
  0x95   : > { %v417_v41 = vmax.f32 %v362_v36, %v401_v38  ;;  %v972_v38 = vld [vmem:[%s1322_s5 + $0x18] sm:$0xff] }
  0x96   : > { %670 = vmatpush.bf16.msra.mxu2 %v972_v38  ;;  %989 = vmatpush.bf16.msrb.mxu3 %v972_v38 }
  0x98   : > { %v363_v37 = vpop.f32.mrf.mxu0 }
  0x99   : > { %v364_v39 = vadd.f32 %v1191_v35, %v363_v37 }
  0x9b   : > { %v402_v40 = vmul.f32 0.01, %v364_v39 }
  0x9d   : > { %v418_v42 = vmax.f32 %v364_v39, %v402_v40 }
  0x9f   : > { %v450_v43 = vpack.c.bf16 %v418_v42, %v417_v41  ;;  %v971_v41 = vld [vmem:[%s1322_s5 + $0x10] sm:$0xff] }
  0xa0   : > { %v366_v44 = vpop.f32.mrf.mxu0  ;;  %671 = vmatpush.bf16.msra.mxu2 %v971_v41  ;;  %990 = vmatpush.bf16.msrb.mxu3 %v971_v41 }
  0xa1   : > { %517 = vmatmul.bf16.vlgmr.msra.gmra.mxu1 %v450_v43  ;;  %v367_v45 = vadd.f32 %v1191_v35, %v366_v44  ;;  %v970_v43 = vld [vmem:[%s1322_s5 + $0x8] sm:$0xff] }
  0xa3   : > { %v403_v47 = vmul.f32 0.01, %v367_v45 }
  0xa4   : > { %672 = vmatpush.bf16.msra.mxu2 %v970_v43  ;;  %991 = vmatpush.bf16.msrb.mxu3 %v970_v43 }
  0xa5   : > { %v419_v50 = vmax.f32 %v367_v45, %v403_v47  ;;  %v969_v47 = vld [vmem:[%s1322_s5] sm:$0xff] }
  0xa8   : > { %v368_v46 = vpop.f32.mrf.mxu0  ;;  %673 = vmatpush.bf16.msra.mxu2 %v969_v47  ;;  %992 = vmatpush.bf16.msrb.mxu3 %v969_v47 }
  0xa9   : > { %v369_v48 = vadd.f32 %v1191_v35, %v368_v46 }
  0xab   : > { %v404_v49 = vmul.f32 0.01, %v369_v48 }
  0xad   : > { %v420_v51 = vmax.f32 %v369_v48, %v404_v49 }
  0xaf   : > { %v451_v52 = vpack.c.bf16 %v420_v51, %v419_v50 }
  0xb0   : > { %v371_v53 = vpop.f32.mrf.mxu0 }
  0xb1   : > { %522 = vmatmul.bf16.gmra.mxu1 %v451_v52  ;;  %v372_v54 = vadd.f32 %v1191_v35, %v371_v53  ;;  %v1236_v53 = vld [vmem:[%s1321_s4] ss:$0 sm:$0xff] }
  0xb3   : > { %v405_v56 = vmul.f32 0.01, %v372_v54 }
  0xb5   : > { %v421_v59 = vmax.f32 %v372_v54, %v405_v56 }
  0xb8   : > { %v373_v55 = vpop.f32.mrf.mxu0 }
  0xb9   : > { %v374_v57 = vadd.f32 %v1191_v35, %v373_v55 }
  0xbb   : > { %v406_v58 = vmul.f32 0.01, %v374_v57 }
  0xbd   : > { %v422_v60 = vmax.f32 %v374_v57, %v406_v58 }
  0xbf   : > { %v452_v61 = vpack.c.bf16 %v422_v60, %v421_v59 }
  0xc0   : > { %v376_v62 = vpop.f32.mrf.mxu0 }
  0xc1   : > { %527 = vmatmul.bf16.gmra.mxu1 %v452_v61  ;;  %v377_v63 = vadd.f32 %v1191_v35, %v376_v62 }
  0xc3   : > { %v407_v1 = vmul.f32 0.01, %v377_v63 }
  0xc5   : > { %v423_v4 = vmax.f32 %v377_v63, %v407_v1 }
  0xc8   : > { %v378_v0 = vpop.f32.mrf.mxu0 }
  0xc9   : > { %v379_v2 = vadd.f32 %v1191_v35, %v378_v0 }
  0xcb   : > { %v408_v3 = vmul.f32 0.01, %v379_v2 }
  0xcd   : > { %v424_v5 = vmax.f32 %v379_v2, %v408_v3 }
  0xcf   : > { %v453_v6 = vpack.c.bf16 %v424_v5, %v423_v4 }
  0xd0   : > { %v381_v7 = vpop.f32.mrf.mxu0 }
  0xd1   : > { %532 = vmatmul.bf16.gmra.mxu1 %v453_v6  ;;  %v382_v8 = vadd.f32 %v1191_v35, %v381_v7 }
  0xd3   : > { %v409_v10 = vmul.f32 0.01, %v382_v8 }
  0xd5   : > { %v425_v13 = vmax.f32 %v382_v8, %v409_v10 }
  0xd8   : > { %v383_v9 = vpop.f32.mrf.mxu0 }
  0xd9   : > { %v384_v11 = vadd.f32 %v1191_v35, %v383_v9 }
  0xdb   : > { %v410_v12 = vmul.f32 0.01, %v384_v11 }
  0xdd   : > { %v426_v14 = vmax.f32 %v384_v11, %v410_v12 }
  0xdf   : > { %v454_v15 = vpack.c.bf16 %v426_v14, %v425_v13 }
  0xe0   : > { %v386_v16 = vpop.f32.mrf.mxu0 }
  0xe1   : > { %537 = vmatmul.bf16.gmra.mxu1 %v454_v15  ;;  %v387_v17 = vadd.f32 %v1191_v35, %v386_v16 }
  0xe3   : > { %v411_v19 = vmul.f32 0.01, %v387_v17 }
  0xe5   : > { %v427_v22 = vmax.f32 %v387_v17, %v411_v19 }
  0xe8   : > { %v388_v18 = vpop.f32.mrf.mxu0 }
  0xe9   : > { %v389_v20 = vadd.f32 %v1191_v35, %v388_v18 }
  0xeb   : > { %v412_v21 = vmul.f32 0.01, %v389_v20 }
  0xed   : > { %v428_v23 = vmax.f32 %v389_v20, %v412_v21 }
  0xef   : > { %v455_v25 = vpack.c.bf16 %v428_v23, %v427_v22 }
  0xf0   : > { %v391_v26 = vpop.f32.mrf.mxu0 }
  0xf1   : > { %542 = vmatmul.bf16.gmra.mxu1 %v455_v25  ;;  %v392_v29 = vadd.f32 %v1191_v35, %v391_v26 }
  0xf3   : > { %v413_v32 = vmul.f32 0.01, %v392_v29 }
  0xf5   : > { %v429_v36 = vmax.f32 %v392_v29, %v413_v32 }
  0xf8   : > { %v393_v31 = vpop.f32.mrf.mxu0 }
  0xf9   : > { %v394_v33 = vadd.f32 %v1191_v35, %v393_v31 }
  0xfb   : > { %v414_v34 = vmul.f32 0.01, %v394_v33 }
  0xfd   : > { %v430_v37 = vmax.f32 %v394_v33, %v414_v34 }
  0xff   : > { %v456_v39 = vpack.c.bf16 %v430_v37, %v429_v36 }
 0x100   : > { %v396_v40 = vpop.f32.mrf.mxu0 }
 0x101   : > { %547 = vmatmul.bf16.vlgmr.msra.gmra.mxu3 %v456_v39  ;;  %v397_v42 = vadd.f32 %v1191_v35, %v396_v40 }
 0x103   : > { %v415_v45 = vmul.f32 0.01, %v397_v42 }
 0x105   : > { %v431_v49 = vmax.f32 %v397_v42, %v415_v45 }
 0x108   : > { %v398_v44 = vpop.f32.mrf.mxu0 }
 0x109   : > { %v399_v46 = vadd.f32 %v1191_v35, %v398_v44 }
 0x10b   : > { %v416_v48 = vmul.f32 0.01, %v399_v46 }
 0x10d   : > { %v432_v50 = vmax.f32 %v399_v46, %v416_v48 }
 0x10f   : > { %v457_v51 = vpack.c.bf16 %v432_v50, %v431_v49 }
 0x111   : > { %552 = vmatmul.bf16.gmra.mxu3 %v457_v51 }
 0x11e   : > { %v518_v52 = vpop.f32.mrf.mxu1 }
 0x11f   : > { %v519_v54 = vadd.f32 %v1236_v53, %v518_v52 }
 0x121   : > { %v558_v55 = vmul.f32 0.01, %v519_v54 }
 0x123   : > { %v574_v58 = vmax.f32 %v519_v54, %v558_v55 }
 0x126   : > { %v520_v35 = vpop.f32.mrf.mxu1 }
 0x127   : > { %v521_v56 = vadd.f32 %v1236_v53, %v520_v35 }
 0x129   : > { %v559_v57 = vmul.f32 0.01, %v521_v56 }
 0x12b   : > { %v575_v59 = vmax.f32 %v521_v56, %v559_v57 }
 0x12d   : > { %v607_v60 = vpack.c.bf16 %v575_v59, %v574_v58 }
 0x12e   : > { %v523_v61 = vpop.f32.mrf.mxu1 }
 0x12f   : > { %674 = vmatmul.bf16.vlgmr.msra.gmra.mxu2 %v607_v60  ;;  %v524_v62 = vadd.f32 %v1236_v53, %v523_v61  ;;  %v1257_v61 = vld [vmem:[%s1323_s6] ss:$0 sm:$0xff] }
 0x131   : > { %v560_v0 = vmul.f32 0.01, %v524_v62 }
 0x133   : > { %v576_v3 = vmax.f32 %v524_v62, %v560_v0 }
 0x136   : > { %v525_v63 = vpop.f32.mrf.mxu1 }
 0x137   : > { %v526_v1 = vadd.f32 %v1236_v53, %v525_v63 }
 0x139   : > { %v561_v2 = vmul.f32 0.01, %v526_v1 }
 0x13b   : > { %v577_v4 = vmax.f32 %v526_v1, %v561_v2 }
 0x13d   : > { %v608_v5 = vpack.c.bf16 %v577_v4, %v576_v3 }
 0x13e   : > { %v528_v6 = vpop.f32.mrf.mxu1 }
 0x13f   : > { %679 = vmatmul.bf16.gmra.mxu2 %v608_v5  ;;  %v529_v7 = vadd.f32 %v1236_v53, %v528_v6 }
 0x141   : > { %v562_v9 = vmul.f32 0.01, %v529_v7 }
 0x143   : > { %v578_v12 = vmax.f32 %v529_v7, %v562_v9 }
 0x146   : > { %v530_v8 = vpop.f32.mrf.mxu1 }
 0x147   : > { %v531_v10 = vadd.f32 %v1236_v53, %v530_v8 }
 0x149   : > { %v563_v11 = vmul.f32 0.01, %v531_v10 }
 0x14b   : > { %v579_v13 = vmax.f32 %v531_v10, %v563_v11 }
 0x14d   : > { %v609_v14 = vpack.c.bf16 %v579_v13, %v578_v12 }
 0x14e   : > { %v533_v15 = vpop.f32.mrf.mxu1 }
 0x14f   : > { %684 = vmatmul.bf16.gmra.mxu2 %v609_v14  ;;  %v534_v16 = vadd.f32 %v1236_v53, %v533_v15 }
 0x151   : > { %v564_v18 = vmul.f32 0.01, %v534_v16 }
 0x153   : > { %v580_v21 = vmax.f32 %v534_v16, %v564_v18 }
 0x156   : > { %v535_v17 = vpop.f32.mrf.mxu1 }
 0x157   : > { %v536_v19 = vadd.f32 %v1236_v53, %v535_v17 }
 0x159   : > { %v565_v20 = vmul.f32 0.01, %v536_v19 }
 0x15b   : > { %v581_v22 = vmax.f32 %v536_v19, %v565_v20 }
 0x15d   : > { %v610_v23 = vpack.c.bf16 %v581_v22, %v580_v21 }
 0x15e   : > { %v538_v24 = vpop.f32.mrf.mxu1 }
 0x15f   : > { %689 = vmatmul.bf16.gmra.mxu2 %v610_v23  ;;  %v539_v25 = vadd.f32 %v1236_v53, %v538_v24 }
 0x161   : > { %v566_v27 = vmul.f32 0.01, %v539_v25 }
 0x163   : > { %v582_v30 = vmax.f32 %v539_v25, %v566_v27 }
 0x166   : > { %v540_v26 = vpop.f32.mrf.mxu1 }
 0x167   : > { %v541_v28 = vadd.f32 %v1236_v53, %v540_v26 }
 0x169   : > { %v567_v29 = vmul.f32 0.01, %v541_v28 }
 0x16b   : > { %v583_v31 = vmax.f32 %v541_v28, %v567_v29 }
 0x16d   : > { %v611_v32 = vpack.c.bf16 %v583_v31, %v582_v30 }
 0x16e   : > { %v543_v33 = vpop.f32.mrf.mxu1 }
 0x16f   : > { %694 = vmatmul.bf16.gmra.mxu2 %v611_v32  ;;  %v544_v34 = vadd.f32 %v1236_v53, %v543_v33 }
 0x171   : > { %v568_v37 = vmul.f32 0.01, %v544_v34 }
 0x173   : > { %v584_v40 = vmax.f32 %v544_v34, %v568_v37 }
 0x176   : > { %v545_v36 = vpop.f32.mrf.mxu1 }
 0x177   : > { %v546_v38 = vadd.f32 %v1236_v53, %v545_v36 }
 0x179   : > { %v569_v39 = vmul.f32 0.01, %v546_v38 }
 0x17b   : > { %v585_v41 = vmax.f32 %v546_v38, %v569_v39 }
 0x17d   : > { %v612_v42 = vpack.c.bf16 %v585_v41, %v584_v40 }
 0x17f   : > { %699 = vmatmul.bf16.gmra.mxu2 %v612_v42 }
 0x184   : > { %v548_v43 = vpop.f32.mrf.mxu3 }
 0x185   : > { %v549_v44 = vadd.f32 %v1236_v53, %v548_v43 }
 0x187   : > { %v570_v46 = vmul.f32 0.01, %v549_v44 }
 0x189   : > { %v586_v49 = vmax.f32 %v549_v44, %v570_v46 }
 0x18c   : > { %v550_v45 = vpop.f32.mrf.mxu3 }
 0x18d   : > { %v551_v47 = vadd.f32 %v1236_v53, %v550_v45 }
 0x18f   : > { %v571_v48 = vmul.f32 0.01, %v551_v47 }
 0x191   : > { %v587_v50 = vmax.f32 %v551_v47, %v571_v48 }
 0x193   : > { %v613_v51 = vpack.c.bf16 %v587_v50, %v586_v49 }
 0x194   : > { %v553_v52 = vpop.f32.mrf.mxu3 }
 0x195   : > { %704 = vmatmul.bf16.vlgmr.msrb.gmra.mxu3 %v613_v51  ;;  %v554_v54 = vadd.f32 %v1236_v53, %v553_v52 }
 0x197   : > { %v572_v55 = vmul.f32 0.01, %v554_v54 }
 0x199   : > { %v588_v58 = vmax.f32 %v554_v54, %v572_v55 }
 0x19c   : > { %v555_v35 = vpop.f32.mrf.mxu3 }
 0x19d   : > { %v556_v56 = vadd.f32 %v1236_v53, %v555_v35 }
 0x19f   : > { %v573_v57 = vmul.f32 0.01, %v556_v56 }
 0x1a1   : > { %v589_v59 = vmax.f32 %v556_v56, %v573_v57 }
 0x1a3   : > { %v614_v60 = vpack.c.bf16 %v589_v59, %v588_v58 }
 0x1a5   : > { %709 = vmatmul.bf16.gmra.mxu3 %v614_v60 }
 0x1b2   : > { %v675_v62 = vpop.f32.mrf.mxu2 }
 0x1b3   : > { %v676_v63 = vadd.f32 %v1257_v61, %v675_v62 }
 0x1b5   : > { %v715_v0 = vsub.f32 0.0, %v676_v63 }
 0x1b7   : > { %v731_v1 = vmul.f32 1.442695, %v715_v0 }
 0x1b9   : > { %1004 = vpow2.f32 %v731_v1 }
 0x1ba   : > { %v677_v2 = vpop.f32.mrf.mxu2 }
 0x1bb   : > { %v678_v53 = vadd.f32 %v1257_v61, %v677_v2 }
 0x1bd   : > { %v716_v3 = vsub.f32 0.0, %v678_v53 }
 0x1bf   : > { %v1005_v4 = vpop.eup %1004  ;;  %v733_v5 = vmul.f32 1.442695, %v716_v3 }
 0x1c0   : > { %v763_v6 = vadd.f32 1.0, %v1005_v4 }
 0x1c1   : > { %1006 = vpow2.f32 %v733_v5 }
 0x1c2   : > { %1008 = vrcp.f32 %v763_v6  ;;  %v680_v7 = vpop.f32.mrf.mxu2 }
 0x1c3   : > { %v681_v8 = vadd.f32 %v1257_v61, %v680_v7 }
 0x1c5   : > { %v717_v9 = vsub.f32 0.0, %v681_v8 }
 0x1c7   : > { %v1007_v10 = vpop.eup %1006  ;;  %v735_v11 = vmul.f32 1.442695, %v717_v9 }
 0x1c8   : > { %v1009_v12 = vpop.eup %1008  ;;  %v764_v13 = vadd.f32 1.0, %v1007_v10 }
 0x1c9   : > { %796 = vst.msk [vmem:[%s1267_s12] sm:$0xff] %vm795_vm1, %v1009_v12  ;;  %1010 = vpow2.f32 %v735_v11 }
 0x1ca   : > { %1012 = vrcp.f32 %v764_v13  ;;  %v682_v14 = vpop.f32.mrf.mxu2 }
 0x1cb   : > { %v683_v15 = vadd.f32 %v1257_v61, %v682_v14 }
 0x1cd   : > { %v718_v16 = vsub.f32 0.0, %v683_v15 }
 0x1cf   : > { %v1011_v17 = vpop.eup %1010  ;;  %v737_v18 = vmul.f32 1.442695, %v718_v16 }
 0x1d0   : > { %v1013_v19 = vpop.eup %1012  ;;  %v765_v20 = vadd.f32 1.0, %v1011_v17 }
 0x1d1   : > { %797 = vst.msk [vmem:[%s1267_s12 + $0x8] sm:$0xff] %vm795_vm1, %v1013_v19  ;;  %1014 = vpow2.f32 %v737_v18 }
 0x1d2   : > { %1016 = vrcp.f32 %v765_v20  ;;  %v685_v21 = vpop.f32.mrf.mxu2 }
 0x1d3   : > { %v686_v22 = vadd.f32 %v1257_v61, %v685_v21 }
 0x1d5   : > { %v719_v23 = vsub.f32 0.0, %v686_v22 }
 0x1d7   : > { %v1015_v24 = vpop.eup %1014  ;;  %v739_v25 = vmul.f32 1.442695, %v719_v23 }
 0x1d8   : > { %v1017_v26 = vpop.eup %1016  ;;  %v766_v27 = vadd.f32 1.0, %v1015_v24 }
 0x1d9   : > { %798 = vst.msk [vmem:[%s1267_s12 + $0x10] sm:$0xff] %vm795_vm1, %v1017_v26  ;;  %1018 = vpow2.f32 %v739_v25 }
 0x1da   : > { %1020 = vrcp.f32 %v766_v27  ;;  %v687_v28 = vpop.f32.mrf.mxu2 }
 0x1db   : > { %v688_v29 = vadd.f32 %v1257_v61, %v687_v28 }
 0x1dd   : > { %v720_v30 = vsub.f32 0.0, %v688_v29 }
 0x1df   : > { %v1019_v31 = vpop.eup %1018  ;;  %v741_v32 = vmul.f32 1.442695, %v720_v30 }
 0x1e0   : > { %v1021_v33 = vpop.eup %1020  ;;  %v767_v34 = vadd.f32 1.0, %v1019_v31 }
 0x1e1   : > { %799 = vst.msk [vmem:[%s1267_s12 + $0x18] sm:$0xff] %vm795_vm1, %v1021_v33  ;;  %1022 = vpow2.f32 %v741_v32 }
 0x1e2   : > { %1024 = vrcp.f32 %v767_v34  ;;  %v690_v36 = vpop.f32.mrf.mxu2 }
 0x1e3   : > { %v691_v37 = vadd.f32 %v1257_v61, %v690_v36 }
 0x1e5   : > { %v721_v38 = vsub.f32 0.0, %v691_v37 }
 0x1e7   : > { %v1023_v39 = vpop.eup %1022  ;;  %v743_v40 = vmul.f32 1.442695, %v721_v38 }
 0x1e8   : > { %v1025_v41 = vpop.eup %1024  ;;  %v768_v42 = vadd.f32 1.0, %v1023_v39 }
 0x1e9   : > { %800 = vst.msk [vmem:[%s1267_s12 + $0x20] sm:$0xff] %vm795_vm1, %v1025_v41  ;;  %1026 = vpow2.f32 %v743_v40 }
 0x1ea   : > { %1028 = vrcp.f32 %v768_v42  ;;  %v692_v43 = vpop.f32.mrf.mxu2 }
 0x1eb   : > { %v693_v44 = vadd.f32 %v1257_v61, %v692_v43 }
 0x1ed   : > { %v722_v45 = vsub.f32 0.0, %v693_v44 }
 0x1ef   : > { %v1027_v46 = vpop.eup %1026  ;;  %v745_v47 = vmul.f32 1.442695, %v722_v45 }
 0x1f0   : > { %v1029_v48 = vpop.eup %1028  ;;  %v769_v49 = vadd.f32 1.0, %v1027_v46 }
 0x1f1   : > { %801 = vst.msk [vmem:[%s1267_s12 + $0x28] sm:$0xff] %vm795_vm1, %v1029_v48  ;;  %1030 = vpow2.f32 %v745_v47 }
 0x1f2   : > { %1032 = vrcp.f32 %v769_v49  ;;  %v695_v50 = vpop.f32.mrf.mxu2 }
 0x1f3   : > { %v696_v51 = vadd.f32 %v1257_v61, %v695_v50 }
 0x1f5   : > { %v723_v52 = vsub.f32 0.0, %v696_v51 }
 0x1f7   : > { %v1031_v54 = vpop.eup %1030  ;;  %v747_v35 = vmul.f32 1.442695, %v723_v52 }
 0x1f8   : > { %v1033_v55 = vpop.eup %1032  ;;  %v770_v56 = vadd.f32 1.0, %v1031_v54 }
 0x1f9   : > { %802 = vst.msk [vmem:[%s1267_s12 + $0x30] sm:$0xff] %vm795_vm1, %v1033_v55  ;;  %1034 = vpow2.f32 %v747_v35 }
 0x1fa   : > { %1036 = vrcp.f32 %v770_v56  ;;  %v697_v57 = vpop.f32.mrf.mxu2 }
 0x1fb   : > { %v698_v58 = vadd.f32 %v1257_v61, %v697_v57 }
 0x1fd   : > { %v724_v59 = vsub.f32 0.0, %v698_v58 }
 0x1ff   : > { %v1035_v60 = vpop.eup %1034  ;;  %v749_v62 = vmul.f32 1.442695, %v724_v59 }
 0x200   : > { %v1037_v63 = vpop.eup %1036  ;;  %v771_v0 = vadd.f32 1.0, %v1035_v60 }
 0x201   : > { %803 = vst.msk [vmem:[%s1267_s12 + $0x38] sm:$0xff] %vm795_vm1, %v1037_v63  ;;  %1038 = vpow2.f32 %v749_v62 }
 0x202   : > { %1040 = vrcp.f32 %v771_v0  ;;  %v700_v1 = vpop.f32.mrf.mxu2 }
 0x203   : > { %v701_v2 = vadd.f32 %v1257_v61, %v700_v1 }
 0x205   : > { %v725_v53 = vsub.f32 0.0, %v701_v2 }
 0x207   : > { %v1039_v3 = vpop.eup %1038  ;;  %v751_v4 = vmul.f32 1.442695, %v725_v53 }
 0x208   : > { %v1041_v5 = vpop.eup %1040  ;;  %v772_v6 = vadd.f32 1.0, %v1039_v3 }
 0x209   : > { %804 = vst.msk [vmem:[%s1267_s12 + $0x40] sm:$0xff] %vm795_vm1, %v1041_v5  ;;  %1042 = vpow2.f32 %v751_v4 }
 0x20a   : > { %1044 = vrcp.f32 %v772_v6  ;;  %v702_v7 = vpop.f32.mrf.mxu2 }
 0x20b   : > { %v703_v8 = vadd.f32 %v1257_v61, %v702_v7 }
 0x20d   : > { %v726_v9 = vsub.f32 0.0, %v703_v8 }
 0x20f   : > { %v1043_v10 = vpop.eup %1042  ;;  %v753_v11 = vmul.f32 1.442695, %v726_v9 }
 0x210   : > { %v1045_v12 = vpop.eup %1044  ;;  %v773_v13 = vadd.f32 1.0, %v1043_v10 }
 0x211   : > { %805 = vst.msk [vmem:[%s1267_s12 + $0x48] sm:$0xff] %vm795_vm1, %v1045_v12  ;;  %1046 = vpow2.f32 %v753_v11 }
 0x212   : > { %1048 = vrcp.f32 %v773_v13 }
 0x217   : > { %v1047_v14 = vpop.eup %1046 }
 0x218   : > { %v1049_v15 = vpop.eup %1048  ;;  %v774_v16 = vadd.f32 1.0, %v1047_v14  ;;  %v705_v17 = vpop.f32.mrf.mxu3 }
 0x219   : > { %806 = vst.msk [vmem:[%s1267_s12 + $0x50] sm:$0xff] %vm795_vm1, %v1049_v15  ;;  %v706_v18 = vadd.f32 %v1257_v61, %v705_v17 }
 0x21a   : > { %1050 = vrcp.f32 %v774_v16 }
 0x21b   : > { %v727_v19 = vsub.f32 0.0, %v706_v18 }
 0x21d   : > { %v755_v20 = vmul.f32 1.442695, %v727_v19 }
 0x21f   : > { %1052 = vpow2.f32 %v755_v20 }
 0x220   : > { %v1051_v21 = vpop.eup %1050  ;;  %v707_v22 = vpop.f32.mrf.mxu3 }
 0x221   : > { %807 = vst.msk [vmem:[%s1267_s12 + $0x58] sm:$0xff] %vm795_vm1, %v1051_v21  ;;  %v708_v23 = vadd.f32 %v1257_v61, %v707_v22 }
 0x223   : > { %v728_v24 = vsub.f32 0.0, %v708_v23 }
 0x225   : > { %v1053_v25 = vpop.eup %1052  ;;  %v757_v26 = vmul.f32 1.442695, %v728_v24 }
 0x226   : > { %v775_v27 = vadd.f32 1.0, %v1053_v25 }
 0x227   : > { %1054 = vpow2.f32 %v757_v26 }
 0x228   : > { %1056 = vrcp.f32 %v775_v27  ;;  %v710_v28 = vpop.f32.mrf.mxu3 }
 0x229   : > { %v711_v29 = vadd.f32 %v1257_v61, %v710_v28 }
 0x22b   : > { %v729_v30 = vsub.f32 0.0, %v711_v29 }
 0x22d   : > { %v1055_v31 = vpop.eup %1054  ;;  %v759_v32 = vmul.f32 1.442695, %v729_v30 }
 0x22e   : > { %v1057_v33 = vpop.eup %1056  ;;  %v776_v34 = vadd.f32 1.0, %v1055_v31 }
 0x22f   : > { %808 = vst.msk [vmem:[%s1267_s12 + $0x60] sm:$0xff] %vm795_vm1, %v1057_v33  ;;  %1058 = vpow2.f32 %v759_v32 }
 0x230   : > { %1060 = vrcp.f32 %v776_v34  ;;  %v712_v36 = vpop.f32.mrf.mxu3 }
 0x231   : > { %v713_v37 = vadd.f32 %v1257_v61, %v712_v36 }
 0x233   : > { %v730_v38 = vsub.f32 0.0, %v713_v37 }
 0x235   : > { %v1059_v39 = vpop.eup %1058  ;;  %v761_v40 = vmul.f32 1.442695, %v730_v38 }
 0x236   : > { %v1061_v41 = vpop.eup %1060  ;;  %v777_v42 = vadd.f32 1.0, %v1059_v39 }
 0x237   : > { %809 = vst.msk [vmem:[%s1267_s12 + $0x68] sm:$0xff] %vm795_vm1, %v1061_v41  ;;  %1062 = vpow2.f32 %v761_v40 }
 0x238   : > { %1064 = vrcp.f32 %v777_v42 }
 0x23d   : > { %v1063_v43 = vpop.eup %1062 }
 0x23e   : > { %v1065_v44 = vpop.eup %1064  ;;  %v778_v45 = vadd.f32 1.0, %v1063_v43 }
 0x23f   : > { %810 = vst.msk [vmem:[%s1267_s12 + $0x70] sm:$0xff] %vm795_vm1, %v1065_v44 }
 0x240   : > { %1066 = vrcp.f32 %v778_v45 }
 0x246   : > { %v1067_v46 = vpop.eup %1066 }
 0x247   : > { %811 = vst.msk [vmem:[%s1267_s12 + $0x78] sm:$0xff] %vm795_vm1, %v1067_v46 }
 0x248 PF: > { %s17_s24 = sadd.s32 1, %s1074_s24  }
 0x249   : > { %p14_p4 = scmp.ge.s32.totalorder %s17_s24, 4  }
 0x24b   :  { %16 = sbr.rel (!%p14_p4) target bundleno = 1 (0x1), region = 78 }

</bundles_post_ra>
